<compile_context>
chip_gen: v7x
topology: tpu7x:2x2x1
jax: 0.10.0
libtpu: 0.0.40
codegen_flags: <defaults>
</compile_context>

<pallas_src>
import functools

import jax
import jax.numpy as jnp
from jax import lax
from jax.experimental import pallas as pl
from jax.experimental.pallas import tpu as pltpu

# the fixed conv weight from LapLasGradient.__init__ (kernel4)
KERNEL4 = ((1.0, 1.0, 1.0),
           (1.0, -8.0, 1.0),
           (1.0, 1.0, 1.0))


def _laplas_kernel(x_ref, o_ref, pad_ref, *, width):
    # x_ref  : (B_TILE, C_in,  HW)   flattened input block
    # o_ref  : (B_TILE, outdim, HW)  flattened output block
    # pad_ref: (B_TILE, HW + 2*W)    f32 staging buffer for shifted taps
    b, _, hw = x_ref.shape
    w = width

    # Every (out, in) filter slice equals kernel4, so the conv reduces to
    # stencil( sum over input channels ).  Accumulate in f32.
    s = jnp.sum(x_ref[...].astype(jnp.float32), axis=1)              # (b, hw)

    # Flat-index helpers for edge masking (image edges in the flattened layout).
    flat = lax.broadcasted_iota(jnp.int32, (b, hw), 1)
    col = flat % w

    # ---- horizontal 3-sum: s[h, w-1] + s[h, w] + s[h, w+1] ----------------
    pad_ref[:, w:w + hw] = s
    p = pad_ref[...]
    left = jnp.where(col > 0, p[:, w - 1:w - 1 + hw], 0.0)
    right = jnp.where(col < w - 1, p[:, w + 1:w + 1 + hw], 0.0)
    row3 = left + s + right                                           # (b, hw)

    # ---- vertical 3-sum of row3: row3[h-1] + row3[h] + row3[h+1] ----------
    pad_ref[:, w:w + hw] = row3
    q = pad_ref[...]
    up = jnp.where(flat >= w, q[:, 0:hw], 0.0)
    down = jnp.where(flat < hw - w, q[:, 2 * w:2 * w + hw], 0.0)
    box3 = up + row3 + down                                           # 3x3 box sum

    # kernel4 = (sum of 8 neighbors) - 8*center = box3x3 - 9*center
    acc = (box3 - 9.0 * s).astype(o_ref.dtype)

    # every output channel is identical; store per channel (no big broadcast)
    for c in range(o_ref.shape[1]):
        o_ref[:, c, :] = acc


def _pick_batch_tile(n, c_in, outdim, hw, itemsize):
    """Largest divisor of n whose double-buffered in+out blocks fit a
    conservative VMEM budget (safe on v7x's 64 MiB) while keeping at least two
    grid steps (feeds both v7x TensorCores) when n > 1."""
    per_b = 2 * (c_in + outdim) * hw * itemsize   # 2x for double buffering
    budget = 16 * 1024 * 1024
    max_tile = max(1, budget // per_b)
    best = 1
    for t in range(1, n + 1):
        if n % t == 0 and t <= max_tile and (n == 1 or n // t >= 2):
            best = t
    return best


def laplas_gradient(x, outdim):
    """Pallas forward equivalent of LapLasGradient(indim, outdim)(x).

    x: (N, C_in, H, W) float32  -> returns (N, outdim, H, W) float32
    """
    n, c_in, h, w = x.shape
    hw = h * w

    # lane-dense layout: flatten spatial dims (free reshape, contiguous)
    x_flat = x.reshape(n, c_in, hw)

    b_tile = _pick_batch_tile(n, c_in, outdim, hw, x.dtype.itemsize)
    grid = (n // b_tile,)

    kernel = functools.partial(_laplas_kernel, width=w)

    out_flat = pl.pallas_call(
        kernel,
        out_shape=jax.ShapeDtypeStruct((n, outdim, hw), x.dtype),
        grid=grid,
        in_specs=[pl.BlockSpec((b_tile, c_in, hw), lambda b: (b, 0, 0))],
        out_specs=pl.BlockSpec((b_tile, outdim, hw), lambda b: (b, 0, 0)),
        scratch_shapes=[pltpu.VMEM((b_tile, hw + 2 * w), jnp.float32)],
        compiler_params=pltpu.CompilerParams(
            dimension_semantics=("parallel",),
            vmem_limit_bytes=32 * 1024 * 1024),
    )(x_flat)

    return out_flat.reshape(n, outdim, h, w)


def _reference(x, outdim):
    """Plain-JAX reference: Conv2d(indim, outdim, 3, padding=1, bias=False)
    with every weight slice equal to kernel4."""
    c_in = x.shape[1]
    k = jnp.asarray(KERNEL4, dtype=jnp.float32)                # (3, 3)
    wgt = jnp.broadcast_to(k, (outdim, c_in, 3, 3))            # (O, I, 3, 3)
    return lax.conv_general_dilated(
        x, wgt, window_strides=(1, 1), padding=((1, 1), (1, 1)),
        dimension_numbers=("NCHW", "OIHW", "NCHW"))


if __name__ == "__main__":
    key = jax.random.PRNGKey(0)
    N, C_in, H, W = 2, 4, 16, 16
    outdim = 4

    x = jax.random.normal(key, (N, C_in, H, W), dtype=jnp.float32)

    out = jax.block_until_ready(laplas_gradient(x, outdim))

    ref = _reference(x, outdim)
    assert out.shape == (N, outdim, H, W)
    assert jnp.allclose(out, ref, atol=1e-4, rtol=1e-4), (
        float(jnp.max(jnp.abs(out - ref))))

    print("KERNEL_OK")
</pallas_src>

<mosaic_0001>
module attributes {stable_mosaic.version = 11 : i64} {
  func.func @_laplas_kernel(%arg0: i32, %arg1: memref<1x4x256xf32, #tpu.memory_space<vmem>>, %arg2: memref<1x4x256xf32, #tpu.memory_space<vmem>>, %arg3: memref<1x288xf32, #tpu.memory_space<vmem>>) attributes {dimension_semantics = [#tpu.dimension_semantics<parallel>], iteration_bounds = array<i64: 2>, scalar_prefetch = 0 : i64, scratch_operands = 1 : i64, tpu.core_type = #tpu.core_type<tc>, window_params = [{transform_indices = @transform_0, window_bounds = array<i64: 1, 4, 256>}, {transform_indices = @transform_1, window_bounds = array<i64: 1, 4, 256>}]} {
    %c0 = arith.constant 0 : index
    %c0_0 = arith.constant 0 : index
    %c0_1 = arith.constant 0 : index
    %0 = vector.load %arg1[%c0, %c0_0, %c0_1] : memref<1x4x256xf32, #tpu.memory_space<vmem>>, vector<1x4x256xf32>
    %cst = arith.constant dense<0.000000e+00> : vector<1x256xf32>
    %1 = vector.multi_reduction <add>, %0, %cst [1] : vector<1x4x256xf32> to vector<1x256xf32>
    %2 = tpu.iota {dimensions = array<i32: 1>} : vector<1x256xi32>
    %c16_i32 = arith.constant 16 : i32
    %c0_i32 = arith.constant 0 : i32
    %3 = arith.cmpi eq, %c16_i32, %c0_i32 : i32
    %c1_i32 = arith.constant 1 : i32
    %4 = arith.select %3, %c1_i32, %c16_i32 : i32
    %5 = vector.broadcast %4 : i32 to vector<1x256xi32>
    %6 = arith.remsi %2, %5 : vector<1x256xi32>
    %c0_i32_2 = arith.constant 0 : i32
    %7 = vector.broadcast %c0_i32_2 : i32 to vector<1x256xi32>
    %8 = arith.cmpi ne, %6, %7 : vector<1x256xi32>
    %c0_i32_3 = arith.constant 0 : i32
    %9 = vector.broadcast %c0_i32_3 : i32 to vector<1x256xi32>
    %10 = arith.cmpi slt, %6, %9 : vector<1x256xi32>
    %c0_i32_4 = arith.constant 0 : i32
    %11 = arith.cmpi slt, %4, %c0_i32_4 : i32
    %12 = vector.broadcast %11 : i1 to vector<1x256xi1>
    %13 = vector.broadcast %12 : vector<1x256xi1> to vector<1x256xi1>
    %14 = arith.xori %10, %13 : vector<1x256xi1>
    %15 = arith.andi %14, %8 : vector<1x256xi1>
    %16 = vector.broadcast %4 : i32 to vector<1x256xi32>
    %17 = arith.addi %6, %16 : vector<1x256xi32>
    %18 = arith.select %15, %17, %6 : vector<1x256xi1>, vector<1x256xi32>
    %c0_5 = arith.constant 0 : index
    %c16 = arith.constant 16 : index
    %19 = vector.load %arg3[%c0_5, %c16] : memref<1x288xf32, #tpu.memory_space<vmem>>, vector<1x256xf32>
    tpu.vector_store %arg3[%c0_5, %c16], %1 {strides = array<i32>} : memref<1x288xf32, #tpu.memory_space<vmem>>, vector<1x256xf32>,
    %c0_6 = arith.constant 0 : index
    %c0_7 = arith.constant 0 : index
    %20 = vector.load %arg3[%c0_6, %c0_7] : memref<1x288xf32, #tpu.memory_space<vmem>>, vector<1x288xf32>
    %c0_i32_8 = arith.constant 0 : i32
    %21 = vector.broadcast %c0_i32_8 : i32 to vector<1x256xi32>
    %22 = arith.cmpi sgt, %18, %21 : vector<1x256xi32>
    %23 = vector.extract_strided_slice %20 {offsets = [0, 15], sizes = [1, 256], strides = [1, 1]} : vector<1x288xf32> to vector<1x256xf32>
    %cst_9 = arith.constant 0.000000e+00 : f32
    %24 = vector.broadcast %cst_9 : f32 to vector<1x256xf32>
    %25 = arith.select %22, %23, %24 : vector<1x256xi1>, vector<1x256xf32>
    %c15_i32 = arith.constant 15 : i32
    %26 = vector.broadcast %c15_i32 : i32 to vector<1x256xi32>
    %27 = arith.cmpi slt, %18, %26 : vector<1x256xi32>
    %28 = vector.extract_strided_slice %20 {offsets = [0, 17], sizes = [1, 256], strides = [1, 1]} : vector<1x288xf32> to vector<1x256xf32>
    %cst_10 = arith.constant 0.000000e+00 : f32
    %29 = vector.broadcast %cst_10 : f32 to vector<1x256xf32>
    %30 = arith.select %27, %28, %29 : vector<1x256xi1>, vector<1x256xf32>
    %31 = arith.addf %25, %1 : vector<1x256xf32>
    %32 = arith.addf %31, %30 : vector<1x256xf32>
    %c0_11 = arith.constant 0 : index
    %c16_12 = arith.constant 16 : index
    %33 = vector.load %arg3[%c0_11, %c16_12] : memref<1x288xf32, #tpu.memory_space<vmem>>, vector<1x256xf32>
    tpu.vector_store %arg3[%c0_11, %c16_12], %32 {strides = array<i32>} : memref<1x288xf32, #tpu.memory_space<vmem>>, vector<1x256xf32>,
    %c0_13 = arith.constant 0 : index
    %c0_14 = arith.constant 0 : index
    %34 = vector.load %arg3[%c0_13, %c0_14] : memref<1x288xf32, #tpu.memory_space<vmem>>, vector<1x288xf32>
    %c16_i32_15 = arith.constant 16 : i32
    %35 = vector.broadcast %c16_i32_15 : i32 to vector<1x256xi32>
    %36 = arith.cmpi sge, %2, %35 : vector<1x256xi32>
    %37 = vector.extract_strided_slice %34 {offsets = [0, 0], sizes = [1, 256], strides = [1, 1]} : vector<1x288xf32> to vector<1x256xf32>
    %cst_16 = arith.constant 0.000000e+00 : f32
    %38 = vector.broadcast %cst_16 : f32 to vector<1x256xf32>
    %39 = arith.select %36, %37, %38 : vector<1x256xi1>, vector<1x256xf32>
    %c240_i32 = arith.constant 240 : i32
    %40 = vector.broadcast %c240_i32 : i32 to vector<1x256xi32>
    %41 = arith.cmpi slt, %2, %40 : vector<1x256xi32>
    %42 = vector.extract_strided_slice %34 {offsets = [0, 32], sizes = [1, 256], strides = [1, 1]} : vector<1x288xf32> to vector<1x256xf32>
    %cst_17 = arith.constant 0.000000e+00 : f32
    %43 = vector.broadcast %cst_17 : f32 to vector<1x256xf32>
    %44 = arith.select %41, %42, %43 : vector<1x256xi1>, vector<1x256xf32>
    %45 = arith.addf %39, %32 : vector<1x256xf32>
    %46 = arith.addf %45, %44 : vector<1x256xf32>
    %cst_18 = arith.constant 9.000000e+00 : f32
    %47 = vector.broadcast %cst_18 : f32 to vector<1x256xf32>
    %48 = arith.mulf %47, %1 : vector<1x256xf32>
    %49 = arith.subf %46, %48 : vector<1x256xf32>
    %c0_19 = arith.constant 0 : index
    %c0_20 = arith.constant 0 : index
    %c0_21 = arith.constant 0 : index
    %50 = vector.load %arg2[%c0_19, %c0_20, %c0_21] : memref<1x4x256xf32, #tpu.memory_space<vmem>>, vector<1x1x256xf32>
    %51 = vector.shape_cast %50 : vector<1x1x256xf32> to vector<1x256xf32>
    %52 = vector.shape_cast %49 : vector<1x256xf32> to vector<1x1x256xf32>
    tpu.vector_store %arg2[%c0_19, %c0_20, %c0_21], %52 {strides = array<i32>} : memref<1x4x256xf32, #tpu.memory_space<vmem>>, vector<1x1x256xf32>,
    %c0_22 = arith.constant 0 : index
    %c1 = arith.constant 1 : index
    %c0_23 = arith.constant 0 : index
    %53 = vector.load %arg2[%c0_22, %c1, %c0_23] : memref<1x4x256xf32, #tpu.memory_space<vmem>>, vector<1x1x256xf32>
    %54 = vector.shape_cast %53 : vector<1x1x256xf32> to vector<1x256xf32>
    %55 = vector.shape_cast %49 : vector<1x256xf32> to vector<1x1x256xf32>
    tpu.vector_store %arg2[%c0_22, %c1, %c0_23], %55 {strides = array<i32>} : memref<1x4x256xf32, #tpu.memory_space<vmem>>, vector<1x1x256xf32>,
    %c0_24 = arith.constant 0 : index
    %c2 = arith.constant 2 : index
    %c0_25 = arith.constant 0 : index
    %56 = vector.load %arg2[%c0_24, %c2, %c0_25] : memref<1x4x256xf32, #tpu.memory_space<vmem>>, vector<1x1x256xf32>
    %57 = vector.shape_cast %56 : vector<1x1x256xf32> to vector<1x256xf32>
    %58 = vector.shape_cast %49 : vector<1x256xf32> to vector<1x1x256xf32>
    tpu.vector_store %arg2[%c0_24, %c2, %c0_25], %58 {strides = array<i32>} : memref<1x4x256xf32, #tpu.memory_space<vmem>>, vector<1x1x256xf32>,
    %c0_26 = arith.constant 0 : index
    %c3 = arith.constant 3 : index
    %c0_27 = arith.constant 0 : index
    %59 = vector.load %arg2[%c0_26, %c3, %c0_27] : memref<1x4x256xf32, #tpu.memory_space<vmem>>, vector<1x1x256xf32>
    %60 = vector.shape_cast %59 : vector<1x1x256xf32> to vector<1x256xf32>
    %61 = vector.shape_cast %49 : vector<1x256xf32> to vector<1x1x256xf32>
    tpu.vector_store %arg2[%c0_26, %c3, %c0_27], %61 {strides = array<i32>} : memref<1x4x256xf32, #tpu.memory_space<vmem>>, vector<1x1x256xf32>,
    return
  }
  func.func @transform_0(%arg0: i32) -> (i32, i32, i32) {
    %c0_i32 = arith.constant 0 : i32
    %c0_i32_0 = arith.constant 0 : i32
    %c0_i32_1 = arith.constant 0 : i32
    return %arg0, %c0_i32, %c0_i32_0 : i32, i32, i32
  }
  func.func @transform_1(%arg0: i32) -> (i32, i32, i32) {
    %c0_i32 = arith.constant 0 : i32
    %c0_i32_0 = arith.constant 0 : i32
    %c0_i32_1 = arith.constant 0 : i32
    return %arg0, %c0_i32, %c0_i32_0 : i32, i32, i32
  }
}

</mosaic_0001>

<bundles_post_ra>
// kernel: tpu_custom_call.1
= control target key start
LH: loop header
LB: loop body
LE: loop exit
PB: predicated region body
PF: predicated region fallthrough
CT: control target
= control target key end

     0   :  { %6 = vsyncpa [#allocation4], 0  ;;  %s840_s0 = inlined_call_operand.hbm [shape: f32[2,4,256], index: 0, kind: input, shape index: {}]   ;;  %s841_s1 = inlined_call_operand.hbm [shape: f32[2,4,256], index: 1, kind: output, shape index: {}]  }
   0x1   :  { %8 = vsyncpa [#allocation4 + $0x1], 0 }
   0x2   :  { %9 = vsyncpa [#allocation5], 0 }
   0x3   :  { %11 = vsyncpa [#allocation5 + $0x1], 0  ;;  %s620_s6 = smov 0   ;;  %s622_s7 = smov 0  }
   0x4   :  { %s624_s8 = smov 0   ;;  %s626_s9 = smov 0  }
   0x5 LB: > { %s641_s10 = sadd.s32 4294967295, %s601_s9   ;;  %s434_s11 = sadd.s32 4294967294, %s601_s9   ;;  %s601_s9 = sphi %s626_s9, %s860_s9   ;;  %s597_s8 = sphi %s624_s8, %s859_s8   ;;  %s593_s7 = sphi %s622_s7, %s858_s7   ;;  %s589_s6 = sphi %s620_s6, %s857_s6  }
   0x6   : > { %s645_s12 = sadd.s32 1, %s601_s9   ;;  %s24_s13 = sadd.s32 1, %s597_s8 }
   0x7   : > { %s21_s14 = ssub.s32 %s601_s9, %s645_s12  ;;  %p31_p0 = scmp.ne.s32.totalorder %s597_s8, %s593_s7 }
   0x8   : > { %p22_p1 = scmp.eq.s32.totalorder %s21_s14, 0  ;;  %p32_p2 = scmp.eq.s32.totalorder %s601_s9, 0 }
   0x9   : > { %p37_p3 = scmp.ne.s32.totalorder %s593_s7, %s589_s6  ;;  %p38_p4 = scmp.eq.s32.totalorder %s641_s10, 0 }
   0xa   : > { %s657_s15 = scalar_select %p22_p1, %s597_s8, %s24_s13  }
   0xb   : > { %p659_p5 = por %p32_p2, %p31_p0  ;;  %p663_p6 = por %p38_p4, %p37_p3 }
   0xc   : > { %p61_p7 = scmp.eq.s32.totalorder %s641_s10, 1  ;;  %p67_p8 = scmp.eq.s32.totalorder %s434_s11, 1 }
   0xd   : > { %p465_p10 = scmp.lt.s32.totalorder %s601_s9, 2  ;;  %s87_s20 = sand.u32 1, %s597_s8  }
   0xe   : > { %p670_p11 = por %p61_p7, %p31_p0  ;;  %p674_p12 = por %p67_p8, %p37_p3 }
   0xf   : > { %s451_s21 = sshll.u32 %s601_s9, 7  ;;  %s437_s22 = sshll.u32 %s87_s20, 3 }
  0x10   : > { %s845_s18 = scalar_select %p670_p11, 1, 0 }
  0x11   : > { %s846_s19 = scalar_select %p674_p12, 1, 0 }
  0x12   : > { %s683_s25 = scalar_lea.hbm %s840_s0, %s451_s21  ;;  %s91_s26 = scalar_lea.vmem [#allocation3], %s437_s22 }
  0x13   : > { %s99_s27 = sshll.u32 %s91_s26, 4  ;;  %p687_p13 = pnand %p465_p10, %p659_p5  ;;  %s691_s27 = int_to_ptr.vmem [resolvable:$true] %s99_s27 }
  0x14   : > { %s88_s29 = scalar_lea.sflag [#allocation4], %s87_s20  ;;  %s505_s30 = scalar_lea.hbm %s683_s25, 128 }
  0x15   : > { %p506_p2 = scmp.ne.s32.totalorder %s683_s25, %s505_s30  ;;  %p507_p3 = pneg %p687_p13 }
  0x16   : > { %s510_s4 = scalar_lea.hbm %s840_s0, 256  ;;  %p511_p5 = scmp.lt.u32.totalorder %s683_s25, %s840_s0 }
  0x17   : > { %p508_p4 = pnand %p507_p3, %p506_p2  ;;  %p512_p8 = scmp.lt.u32.totalorder %s510_s4, %s505_s30 }
  0x18   : > { %p514_p9 = scmp.lt.u32.totalorder %s505_s30, %s683_s25 }
  0x19   : > { %p509_p7 = pneg %p508_p4  ;;  %p513_p10 = por %p512_p8, %p511_p5 }
  0x1b   : > { %p515_p0 = por %p514_p9, %p513_p10 }
  0x1d   : > { %p516_p1 = pnand %p515_p0, %p509_p7 }
  0x1f   : > { %519 = shalt.err (!%p516_p1)
}
  0x20   : > { %s520_s13 = scalar_lea.vmem %s691_s27, 128  ;;  %s603_s14 = smov [#allocation3]  }
  0x21   : > { %p521_p2 = scmp.ne.s32.totalorder %s691_s27, %s520_s13  ;;  %s525_s16 = sshll.u32 %s603_s14, 4  ;;  %s526_s16 = int_to_ptr.vmem [resolvable:$false] %s525_s16 }
  0x22   : > { %s527_s20 = scalar_lea.vmem %s526_s16, 256  ;;  %p528_p11 = scmp.lt.s32.totalorder %s691_s27, %s526_s16 }
  0x23   : > { %p523_p4 = pnand %p521_p2, %p507_p3  ;;  %p529_p5 = scmp.lt.s32.totalorder %s527_s20, %s520_s13 }
  0x25   : > { %p524_p12 = pneg %p523_p4  ;;  %p530_p8 = por %p529_p5, %p528_p11 }
  0x27   : > { %p531_p9 = pnand %p530_p8, %p524_p12 }
  0x29   : > { %534 = shalt.err (!%p531_p9)
}
  0x2a   : > { %460 = dma.hbm_to_vmem [thread:$0]  (!%p687_p13), %s683_s25, 128, %s691_s27, %s88_s29  }
  0x2b   : > { %p848_p0 = scmp.lt.s32.totalorder %s601_s9, 3  ;;  %p849_p1 = scmp.ge.s32.totalorder %s601_s9, 1 }
  0x2d   : > { %p105_p3 = pnand %p849_p1, %p848_p0 }
  0x2e   : > { %s725_s21 = sand.u32 (!%p105_p3), 1, %s593_s7  }
  0x2f   : > { %108 = sbr.rel (%p105_p3) target bundleno = 611 (0x263), region = 24  ;;  %s441_s22 = sshll.u32 (!%p105_p3), %s725_s21, 3 }
  0x30   : > { %s111_s23 = scalar_lea.sflag (!%p105_p3), [#allocation4], %s725_s21  ;;  %s114_s24 = scalar_lea.vmem (!%p105_p3), [#allocation3], %s441_s22 }
  0x36   : > { %580 = dma.done.wait (%p663_p6), %s111_s23, 128  }
  0x37   : > { %582 = vsyncadd (%p663_p6), %s111_s23, 4294967168  ;;  %vm137_vm0 = vcmask 1043456   ;;  %v133_v0 = vld [vmem:[%s114_s24] sm:$0xff]  ;;  %v152_v9 = vlaneseq  ;;  %v604_v10 = vmov 1966171168   ;;  %s605_s17 = smov 16  }
  0x38   : > { %v135_v1 = vcombine.high %v133_v0, %v133_v0  ;;  %v138_v2 = vsel %vm137_vm0, %v133_v0, 0.0  ;;  %v183_v11 = vunpack.c.l.s4 %v604_v10  ;;  %vm199_vm3 = vcmask 130048   ;;  %s606_s25 = smov 113   ;;  %s607_s26 = smov 111  }
  0x39   : > { %v139_v3 = vrot.slane %v138_v2, 4  ;;  %v736_v17 = vshrl.u32 %v152_v9, 7  ;;  %vm751_vm1 = vcmp.ge.s32.totalorder %v152_v9, 16  ;;  %vm756_vm2 = vcmp.lt.s32.totalorder %v152_v9, 272  ;;  %s608_s27 = smov 96   ;;  %s452_s28 = sshll.u32 %s641_s10, 7 }
  0x3a   : > { %v145_v4 = vsel %vm137_vm0, %v135_v1, 0.0  ;;  %v184_v16 = vunpack.c.0.s8 %v183_v11  ;;  %vm205_vm4 = vmand %vm751_vm1, %vm756_vm2  ;;  %v153_v37 = vand.u32 127, %v152_v9  ;;  %vm229_vm5 = vcmask 924672   ;;  %s132_s29 = scalar_lea.vmem [#allocation6], %s441_s22  ;;  %s796_s4 = scalar_lea.hbm %s841_s1, %s452_s28 }
  0x3b   : > { %v140_v5 = vadd.f32 %v139_v3, %v138_v2  ;;  %v146_v6 = vrot.slane %v145_v4, 4  ;;  %v217_v30 = vsub.s32 1, %v736_v17  ;;  %v213_v31 = vsub.s32 0, %v736_v17  ;;  %s364_s30 = sshll.u32 %s132_s29, 4  ;;  %s350_s10 = scalar_lea.sflag [#allocation5], %s725_s21  ;;  %s798_s30 = int_to_ptr.vmem [resolvable:$true] %s364_s30 }
  0x3c   : > { %v743_v21 = vsub.s32 %v184_v16, %v736_v17  ;;  %v221_v35 = vsub.s32 2, %v736_v17  ;;  %v154_v38 = vadd.s32 128, %v153_v37  ;;  %v159_v39 = vand.u32 15, %v153_v37  ;;  %s535_s5 = scalar_lea.vmem %s798_s30, 128  ;;  %p854_p11 = scmp.ne.s32.totalorder %s845_s18, 0 }
  0x3d   : > { %v141_v7 = vrot.slane %v140_v5, 2  ;;  %v147_v8 = vadd.f32 %v146_v6, %v145_v4  ;;  %vm244_vm8 = vcmask 908288   ;;  %vm306_vm11 = vcmask 785408   ;;  %p536_p6 = scmp.ne.s32.totalorder %s798_s30, %s535_s5  ;;  %s609_s11 = smov [#allocation6]  }
  0x3e   : > { %v166_v40 = vand.u32 15, %v154_v38  ;;  %vm208_vm6 = vcmp.gt.s32.totalorder %v159_v39, 0  ;;  %vm236_vm9 = vcmp.lt.s32.totalorder %v159_v39, 15  ;;  %vm279_vm12 = vcmp.ge.s32.totalorder %v153_v37, 16  ;;  %s539_s13 = sshll.u32 %s609_s11, 4  ;;  %s540_s13 = int_to_ptr.vmem [resolvable:$false] %s539_s13 }
  0x3f   : > { %v142_v12 = vadd.f32 %v141_v7, %v140_v5  ;;  %v148_v13 = vrot.slane %v147_v8, 2  ;;  %vm295_vm13 = vcmp.lt.s32.totalorder %v154_v38, 240  ;;  %vm340_vm14 = vcmp.lt.s32.totalorder %v152_v9, 256  ;;  %p537_p12 = pnand %p536_p6, %p854_p11  ;;  %s541_s14 = scalar_lea.vmem %s540_s13, 256 }
  0x40   : > { %vm209_vm7 = vcmp.gt.s32.totalorder %v166_v40, 0  ;;  %vm237_vm10 = vcmp.lt.s32.totalorder %v166_v40, 15  ;;  %p542_p7 = scmp.lt.s32.totalorder %s798_s30, %s540_s13  ;;  %p543_p10 = scmp.lt.s32.totalorder %s541_s14, %s535_s5 }
  0x41   : > { %v143_v14 = vrot.slane %v142_v12, 1  ;;  %v149_v15 = vadd.f32 %v148_v13, %v147_v8  ;;  %p538_p13 = pneg %p537_p12 }
  0x42   : > { %p544_p2 = por %p543_p10, %p542_p7 }
  0x43   : > { %v738_v18 = vadd.f32 %v143_v14, %v142_v12  ;;  %v150_v19 = vrot.slane %v149_v15, 1 }
  0x44   : > { %p545_p4 = pnand %p544_p2, %p538_p13 }
  0x45   : > { %v740_v20 = vadd.f32 %v150_v19, %v149_v15  ;;  %v317_v14 = vmul.f32 9.0, %v738_v18 }
  0x47   : > { %v181_v22 = vcombine.low %v738_v18, %v740_v20  ;;  %v318_v12 = vmul.f32 9.0, %v740_v20 }
  0x49   : > { %v188_v23 = vrot.slane %v181_v22, %v743_v21 }
  0x4b   : > { %v195_v24 = vrot.slane %v188_v23, %v743_v21 }
  0x4d   : > { %196 = vrot.lane.b32.xlu0 %v195_v24, %s605_s17 }
  0xbf   : > { %v197_v27 = vpop.permute.xlu0 %196 }
  0xc0   : > { %v198_v28 = vrot.slane %v197_v27, 7 }
  0xc2   : > { %v200_v29 = vsel %vm199_vm3, %v198_v28, %v197_v27 }
  0xc3   : > { %206 = vst.msk [vmem:[#allocation2] sm:$0x7] %vm205_vm4, %v200_v29 }
  0xca   : > { %v207_v32 = vld [vmem:[#allocation2] sm:$0x7] }
  0xcb   : > { %v218_v33 = vrot.slane %v207_v32, %v217_v30  ;;  %v214_v34 = vrot.slane %v207_v32, %v213_v31  ;;  %v222_v36 = vrot.slane %v207_v32, %v221_v35 }
  0xcd   : > { %225 = vrot.lane.b32.xlu1 %v218_v33, %s606_s25  ;;  %223 = vrot.lane.b32.xlu0 %v214_v34, %s606_s25 }
  0xd1   : > { %227 = vrot.lane.b32.xlu1 %v222_v36, %s606_s25  ;;  %238 = vrot.lane.b32.xlu0 %v214_v34, %s607_s26 }
  0xd5   : > { %240 = vrot.lane.b32.xlu1 %v218_v33, %s607_s26  ;;  %242 = vrot.lane.b32.xlu0 %v222_v36, %s607_s26 }
 0x13f   : > { %v226_v41 = vpop.permute.xlu1 %225  ;;  %v224_v42 = vpop.permute.xlu0 %223 }
 0x140   : > { %v230_v43 = vsel %vm229_vm5, %v224_v42, %v226_v41 }
 0x141   : > { %v234_v47 = vsel %vm208_vm6, %v230_v43, 0.0 }
 0x142   : > { %v251_v51 = vadd.f32 %v234_v47, %v738_v18 }
 0x143   : > { %v228_v44 = vpop.permute.xlu1 %227  ;;  %v239_v45 = vpop.permute.xlu0 %238 }
 0x144   : > { %v231_v46 = vsel %vm229_vm5, %v226_v41, %v228_v44 }
 0x145   : > { %v235_v48 = vsel %vm209_vm7, %v231_v46, 0.0 }
 0x146   : > { %v252_v52 = vadd.f32 %v235_v48, %v740_v20 }
 0x147   : > { %v241_v49 = vpop.permute.xlu1 %240  ;;  %v243_v50 = vpop.permute.xlu0 %242 }
 0x148   : > { %v245_v53 = vsel %vm244_vm8, %v239_v45, %v241_v49  ;;  %v246_v54 = vsel %vm244_vm8, %v241_v49, %v243_v50 }
 0x149   : > { %v249_v55 = vsel %vm236_vm9, %v245_v53, 0.0  ;;  %v250_v56 = vsel %vm237_vm10, %v246_v54, 0.0 }
 0x14a   : > { %v253_v57 = vadd.f32 %v251_v51, %v249_v55  ;;  %v254_v58 = vadd.f32 %v252_v52, %v250_v56 }
 0x14c   : > { %v257_v59 = vcombine.low %v253_v57, %v254_v58 }
 0x14e   : > { %v264_v60 = vrot.slane %v257_v59, %v743_v21 }
 0x150   : > { %v271_v61 = vrot.slane %v264_v60, %v743_v21 }
 0x152   : > { %272 = vrot.lane.b32.xlu1 %v271_v61, %s605_s17 }
 0x1c4   : > { %v273_v62 = vpop.permute.xlu1 %272 }
 0x1c5   : > { %v274_v63 = vrot.slane %v273_v62, 7 }
 0x1c7   : > { %v275_v0 = vsel %vm199_vm3, %v274_v63, %v273_v62 }
 0x1c8   : > { %277 = vst.msk [vmem:[#allocation2] sm:$0x7] %vm205_vm4, %v275_v0 }
 0x1cf   : > { %v278_v1 = vld [vmem:[#allocation2] sm:$0x7] }
 0x1d0   : > { %v299_v2 = vrot.slane %v278_v1, %v221_v35  ;;  %v289_v3 = vrot.slane %v278_v1, %v217_v30  ;;  %v285_v4 = vrot.slane %v278_v1, %v213_v31 }
 0x1d2   : > { %304 = vrot.lane.b32.xlu1 %v299_v2, %s608_s27  ;;  %302 = vrot.lane.b32.xlu0 %v289_v3, %s608_s27  ;;  %v292_v8 = vsel %vm279_vm12, %v285_v4, 0.0  ;;  %v314_v11 = vadd.f32 %v289_v3, %v254_v58 }
 0x1d3   : > { %v313_v16 = vadd.f32 %v292_v8, %v253_v57 }
 0x1d6   : > { %300 = vrot.lane.b32.xlu0 %v285_v4, %s608_s27 }
 0x244   : > { %v305_v5 = vpop.permute.xlu1 %304  ;;  %v303_v6 = vpop.permute.xlu0 %302 }
 0x245   : > { %v308_v7 = vsel %vm306_vm11, %v303_v6, %v305_v5 }
 0x246   : > { %v312_v10 = vsel %vm295_vm13, %v308_v7, 0.0 }
 0x247   : > { %v316_v13 = vadd.f32 %v314_v11, %v312_v10 }
 0x248   : > { %v301_v15 = vpop.permute.xlu0 %300 }
 0x249   : > { %v307_v17 = vsel %vm306_vm11, %v301_v15, %v303_v6  ;;  %v320_v22 = vsub.f32 %v316_v13, %v318_v12 }
 0x24a   : > { %v315_v19 = vadd.f32 %v313_v16, %v307_v17 }
 0x24c   : > { %v319_v23 = vsub.f32 %v315_v19, %v317_v14 }
 0x24e   : > { %v323_v24 = vcombine.low %v319_v23, %v320_v22 }
 0x250   : > { %v330_v25 = vrot.slane %v323_v24, %v743_v21 }
 0x252   : > { %v337_v20 = vrot.slane %v330_v25, %v743_v21 }
 0x254   : > { %342 = vst.msk [vmem:[%s132_s29] ss:$4 sm:$0x3] %vm340_vm14, %v337_v20  ;;  %443 = vst.msk [vmem:[%s132_s29 + $0x1] ss:$4 sm:$0x3] %vm340_vm14, %v337_v20 }
 0x255   : > { %444 = vst.msk [vmem:[%s132_s29 + $0x2] ss:$4 sm:$0x3] %vm340_vm14, %v337_v20  ;;  %445 = vst.msk [vmem:[%s132_s29 + $0x3] ss:$4 sm:$0x3] %vm340_vm14, %v337_v20 }
 0x256   : > { %548 = shalt.err (!%p545_p4)
}
 0x257   : > { %s549_s16 = scalar_lea.hbm %s796_s4, 128  ;;  %s553_s22 = scalar_lea.hbm %s841_s1, 256 }
 0x258   : > { %p550_p5 = scmp.ne.s32.totalorder %s796_s4, %s549_s16  ;;  %p554_p0 = scmp.lt.u32.totalorder %s796_s4, %s841_s1 }
 0x259   : > { %p555_p1 = scmp.lt.u32.totalorder %s553_s22, %s549_s16  ;;  %p557_p6 = scmp.lt.u32.totalorder %s549_s16, %s796_s4 }
 0x25a   : > { %p551_p8 = pnand %p550_p5, %p854_p11 }
 0x25b   : > { %p556_p3 = por %p555_p1, %p554_p0 }
 0x25c   : > { %p552_p9 = pneg %p551_p8 }
 0x25d   : > { %p558_p12 = por %p557_p6, %p556_p3 }
 0x25f   : > { %p559_p13 = pnand %p558_p12, %p552_p9 }
 0x261   : > { %562 = shalt.err (!%p559_p13)
}
 0x262   : > { %455 = dma.vmem_to_hbm [thread:$0]  (%p854_p11), %s798_s30, 128, %s796_s4, %s350_s10  }
 0x263 PF: > { %s376_s17 = sand.u32 1, %s589_s6   ;;  %p855_p7 = scmp.ne.s32.totalorder %s846_s19, 0 }
 0x264   : > { %p856_p10 = scmp.ge.s32.totalorder %s601_s9, 2  ;;  %s377_s25 = scalar_lea.sflag [#allocation5], %s376_s17 }
 0x266   : > { %p462_p2 = pnand %p856_p10, %p855_p7 }
 0x268   : > { %584 = dma.done.wait (!%p462_p2), %s377_s25, 128  }
 0x269   : > { %586 = vsyncadd (!%p462_p2), %s377_s25, 4294967168  ;;  %p14_p4 = scmp.ge.s32.totalorder %s645_s12, 4   ;;  %s857_s6 = smov %s593_s7 }
 0x26a   : > { %s858_s7 = smov %s597_s8  ;;  %s859_s8 = smov %s657_s15 }
 0x26b   : > { %s860_s9 = smov %s645_s12  ;;  %16 = sbr.rel (!%p14_p4) target bundleno = 5 (0x5), region = 72 }
 0x272   :  { %382 = vsyncpa [#allocation4], 1 }
 0x273   :  { %384 = vsyncpa [#allocation4 + $0x1], 1 }
 0x274   :  { %385 = vsyncpa [#allocation5], 1 }
 0x275   :  { %387 = vsyncpa [#allocation5 + $0x1], 1 }

</bundles_post_ra>
